<compile_context>
chip_gen: v7x
topology: tpu7x:2x2x1
jax: 0.10.0
libtpu: 0.0.40
codegen_flags: <defaults>
</compile_context>

<pallas_src>
import math
from functools import partial

import jax
import jax.numpy as jnp
from jax.experimental import pallas as pl
from jax.experimental.pallas import tpu as pltpu


# ----------------------------- Pallas kernel ------------------------------ #
def _routing_kernel(x_ref, w_ref, o_ref, slab_ref, *, n_caps, d):
    """One grid step = one (batch element, spatial tile).

    x_ref   : (n_caps, hw_tile, d)   activations, original capsule-major layout
    w_ref   : (n_caps*d, n_out*d)    fused bf16 routing weight (constant index -> stays VMEM resident)
    o_ref   : (hw_tile, n_out*d)     lane-dense output tile (rows = spatial positions)
    slab_ref: (hw_tile, n_caps*d)    VMEM scratch: GEMM LHS, capsules laid out along lanes
    """
    # On-chip relayout: static lane-window copies (fully overwritten every step).
    # This replaces the old host-side transpose+pad, so activations cross HBM once.
    for n in range(n_caps):
        slab_ref[:, n * d:(n + 1) * d] = x_ref[n]

    # Single MXU GEMM, bf16 operands, f32 accumulation.  The fused weight already
    # contains both per-capsule pose matmuls and the uniform-softmax 1/n_out scale
    # (sum over in-capsules / n_out; exact only for the next_pose=None branch).
    acts = slab_ref[...].astype(w_ref.dtype)
    out = jnp.dot(acts, w_ref[...], preferred_element_type=jnp.float32)
    o_ref[...] = out.astype(o_ref.dtype)


# ------------------------------ host wrapper ------------------------------ #
def _pick_hw_tile(hw, max_hw_tile):
    if hw <= max_hw_tile:
        return hw
    start = max_hw_tile - (max_hw_tile % 8)
    for cand in range(start, 7, -8):         # largest multiple-of-8 divisor of hw
        if hw % cand == 0:
            return cand
    return hw                                # fallback: full extent (always legal)


def bilinear_routing_forward(current_pose, w_current, w_next, *,
                             matrix_pose=True, layer_type="conv",
                             max_hw_tile=2048):
    """Pallas implementation of BilinearRouting.forward (next_pose=None branch)."""
    if layer_type == "conv":
        B, K1, K2, n_in, H, W, D = current_pose.shape
        N = K1 * K2 * n_in
        HW = H * W
    elif layer_type == "FC":
        B, N, D = current_pose.shape
        H = W = HW = 1
    else:
        raise ValueError(f"unknown layer_type {layer_type!r}")

    n_out = w_next.shape[0]
    if matrix_pose:
        r = c = int(math.isqrt(D))
        assert r * c == D, f"matrix_pose=True needs a square pose dim, got D={D}"
    else:
        r, c = 1, D

    # ---- fused weight (tiny; constant-folded under jit) --------------------------
    #   out[pos, o, j, k] = sum_{n,p} x[pos, n, j*c + p] * fused[n, p, o, k]
    #   fused[n, p, o, k] = 1/n_out * sum_q wc[n, p, q] * wn[o, q, k]
    wc = w_current.reshape(N, c, c).astype(jnp.float32)
    wn = w_next.reshape(n_out, c, c).astype(jnp.float32)
    fused = jnp.einsum("npq,oqk->npok", wc, wn, precision="highest") / n_out
    eye_r = jnp.eye(r, dtype=fused.dtype)                    # block-diag over pose row j
    w3 = jnp.einsum("jJ,npok->njpoJk", eye_r, fused)         # (N, r, c, n_out, r, c)
    w3 = w3.reshape(N * D, n_out * D).astype(jnp.bfloat16)   # MXU-native operand dtype

    # ---- activations: contiguous-dim merge only (no transpose, no pad, no copy) --
    x = current_pose.reshape(B, N, HW, D)

    # ---- spatial tiling: per-step GEMM-M = hw_tile; always divides HW exactly ----
    hw_tile = _pick_hw_tile(HW, max_hw_tile)
    num_hw_tiles = HW // hw_tile
    # v7x has 2 TensorCores: keep >= 2 (even) parallel grid blocks when possible.
    if B * num_hw_tiles < 2 and HW >= 16 and HW % 16 == 0:
        hw_tile = HW // 2
        num_hw_tiles = 2
    ncols = n_out * D

    # VMEM/step @ max_hw_tile=2048 for this config:
    #   x block 2*(N*hw_tile*D*4) + slab (hw_tile*N*D*4) + out 2*(hw_tile*ncols*4)
    #   + resident weight (N*D*ncols*2)  ~= 16 MiB  -> fits the 32 MiB scoped default
    #   on every generation (incl. v7x's 64 MiB part); no vmem_limit_bytes needed.
    out_flat = pl.pallas_call(
        partial(_routing_kernel, n_caps=N, d=D),
        out_shape=jax.ShapeDtypeStruct((B, HW, ncols), current_pose.dtype),
        grid_spec=pltpu.PrefetchScalarGridSpec(
            num_scalar_prefetch=0,
            grid=(B, num_hw_tiles),
            in_specs=[
                pl.BlockSpec((None, N, hw_tile, D), lambda b, t: (b, 0, t, 0)),
                pl.BlockSpec((N * D, ncols), lambda b, t: (0, 0)),
            ],
            out_specs=pl.BlockSpec((None, hw_tile, ncols), lambda b, t: (b, t, 0)),
            scratch_shapes=[pltpu.VMEM((hw_tile, N * D), current_pose.dtype)],
        ),
        compiler_params=pltpu.CompilerParams(
            dimension_semantics=("parallel", "parallel")),
    )(x, w3)

    if layer_type == "conv":
        out = out_flat.reshape(B, H, W, n_out, D)
        out = jnp.transpose(out, (0, 3, 1, 2, 4))             # (B, n_out, H, W, D)
    else:
        out = out_flat.reshape(B, n_out, D)
        # TODO(synk): confirm FC-branch output rank matches torch squeeze(1) exactly.
    return out


# ------------------------- Chunk module forward ---------------------------- #
def chunk_forward(x, chunks, fn, along_dim=-1):
    """`Chunk.forward` semantics: split x along `along_dim`, apply fn, concatenate.

    Exact torch.chunk parity for evenly divisible splits.
    TODO(synk): torch.chunk's remainder distribution (ceil-sized leading chunks) differs
    from jnp.array_split when the split is uneven.
    """
    pieces = jnp.array_split(x, chunks, axis=along_dim)
    return jnp.concatenate([fn(p) for p in pieces], axis=along_dim)


# --------------------------- pure-JAX reference ---------------------------- #
def _reference_forward(current_pose, w_current, w_next, *, matrix_pose=True):
    B, K1, K2, n_in, H, W, D = current_pose.shape
    m = int(math.isqrt(D))
    n_out = w_next.shape[0]
    cp = jnp.transpose(current_pose, (0, 4, 5, 1, 2, 3, 6))
    cp = cp.reshape(B * H * W, K1 * K2 * n_in, D)
    N = cp.shape[1]
    wc = w_current.reshape(N, m, m)
    cp_m = cp.reshape(-1, N, m, m)
    cp_m = jnp.einsum("bnij,njk->bnik", cp_m, wc, precision="highest")
    cp2 = cp_m.reshape(-1, N, D)
    dots = jax.nn.softmax(jnp.full((cp.shape[0], n_out, N), D ** (-0.5)), axis=-2)
    mixed = jnp.einsum("bij,bje->bie", dots, cp2, precision="highest")
    mixed_m = mixed.reshape(-1, n_out, m, m)
    out = jnp.einsum("boij,ojk->boik", mixed_m, w_next, precision="highest")
    out = out.reshape(B, H, W, n_out, D)
    return jnp.transpose(out, (0, 3, 1, 2, 4))


# ---------------------------------- main ----------------------------------- #
if __name__ == "__main__":
    # module config (matrix_pose=True, layer_type='conv')
    B = 2
    kernel_size = 3
    in_n_capsules = 4
    out_n_capsules = 8
    in_d_capsules = 16            # pose_dim; matrix_pose_dim = 4
    H_out = W_out = 4
    m = int(math.isqrt(in_d_capsules))

    key = jax.random.PRNGKey(0)
    k_x, k_wc, k_wn = jax.random.split(key, 3)

    # deterministic parameter init (matches nn.Parameter(0.02 * randn(...)) shapes)
    w_current = 0.02 * jax.random.normal(
        k_wc, (kernel_size, kernel_size, in_n_capsules, m, m), jnp.float32)
    w_next = 0.02 * jax.random.normal(
        k_wn, (out_n_capsules, m, m), jnp.float32)

    # input: pre-unfolded conv patches (B, K, K, N_in, H_out, W_out, D)
    current_pose = jax.random.normal(
        k_x, (B, kernel_size, kernel_size, in_n_capsules, H_out, W_out,
              in_d_capsules), jnp.float32)

    routing_fn = jax.jit(partial(bilinear_routing_forward,
                                 w_current=w_current, w_next=w_next,
                                 matrix_pose=True, layer_type="conv"))

    # direct call
    out = jax.block_until_ready(routing_fn(current_pose))
    ref = jax.block_until_ready(
        _reference_forward(current_pose, w_current, w_next, matrix_pose=True))

    assert out.shape == (B, out_n_capsules, H_out, W_out, in_d_capsules), out.shape
    assert jnp.allclose(out, ref, rtol=1e-2, atol=1e-3), \
        float(jnp.max(jnp.abs(out - ref)))

    # `Chunk` module forward: chunk along the batch dim, apply the Pallas routing fn,
    # concatenate (identical result since the routing fn is batch-independent).
    out_chunked = jax.block_until_ready(
        chunk_forward(current_pose, chunks=2, fn=routing_fn, along_dim=0))
    assert out_chunked.shape == out.shape
    assert jnp.allclose(out_chunked, ref, rtol=1e-2, atol=1e-3), \
        float(jnp.max(jnp.abs(out_chunked - ref)))

    print("KERNEL_OK")
</pallas_src>

<mosaic_0001>
module attributes {stable_mosaic.version = 11 : i64} {
  func.func @_routing_kernel(%arg0: i32, %arg1: i32, %arg2: memref<1x36x16x16xf32, #tpu.memory_space<vmem>>, %arg3: memref<576x128xbf16, #tpu.memory_space<vmem>>, %arg4: memref<1x16x128xf32, #tpu.memory_space<vmem>>, %arg5: memref<16x576xf32, #tpu.memory_space<vmem>>) attributes {dimension_semantics = [#tpu.dimension_semantics<parallel>, #tpu.dimension_semantics<parallel>], iteration_bounds = array<i64: 2, 1>, scalar_prefetch = 0 : i64, scratch_operands = 1 : i64, tpu.core_type = #tpu.core_type<tc>, window_params = [{transform_indices = @transform_0, window_bounds = array<i64: 1, 36, 16, 16>}, {pipeline_mode = #tpu.pipeline_mode<synchronous>, transform_indices = @transform_1, window_bounds = array<i64: 576, 128>}, {transform_indices = @transform_2, window_bounds = array<i64: 1, 16, 128>}]} {
    %c0 = arith.constant 0 : index
    %c0_0 = arith.constant 0 : index
    %c0_1 = arith.constant 0 : index
    %c0_2 = arith.constant 0 : index
    %0 = vector.load %arg2[%c0, %c0_0, %c0_1, %c0_2] : memref<1x36x16x16xf32, #tpu.memory_space<vmem>>, vector<1x1x16x16xf32>
    %1 = vector.shape_cast %0 : vector<1x1x16x16xf32> to vector<16x16xf32>
    %c0_3 = arith.constant 0 : index
    %c0_4 = arith.constant 0 : index
    %2 = vector.load %arg5[%c0_3, %c0_4] : memref<16x576xf32, #tpu.memory_space<vmem>>, vector<16x16xf32>
    tpu.vector_store %arg5[%c0_3, %c0_4], %1 {strides = array<i32>} : memref<16x576xf32, #tpu.memory_space<vmem>>, vector<16x16xf32>,
    %c0_5 = arith.constant 0 : index
    %c1 = arith.constant 1 : index
    %c0_6 = arith.constant 0 : index
    %c0_7 = arith.constant 0 : index
    %3 = vector.load %arg2[%c0_5, %c1, %c0_6, %c0_7] : memref<1x36x16x16xf32, #tpu.memory_space<vmem>>, vector<1x1x16x16xf32>
    %4 = vector.shape_cast %3 : vector<1x1x16x16xf32> to vector<16x16xf32>
    %c0_8 = arith.constant 0 : index
    %c16 = arith.constant 16 : index
    %5 = vector.load %arg5[%c0_8, %c16] : memref<16x576xf32, #tpu.memory_space<vmem>>, vector<16x16xf32>
    tpu.vector_store %arg5[%c0_8, %c16], %4 {strides = array<i32>} : memref<16x576xf32, #tpu.memory_space<vmem>>, vector<16x16xf32>,
    %c0_9 = arith.constant 0 : index
    %c2 = arith.constant 2 : index
    %c0_10 = arith.constant 0 : index
    %c0_11 = arith.constant 0 : index
    %6 = vector.load %arg2[%c0_9, %c2, %c0_10, %c0_11] : memref<1x36x16x16xf32, #tpu.memory_space<vmem>>, vector<1x1x16x16xf32>
    %7 = vector.shape_cast %6 : vector<1x1x16x16xf32> to vector<16x16xf32>
    %c0_12 = arith.constant 0 : index
    %c32 = arith.constant 32 : index
    %8 = vector.load %arg5[%c0_12, %c32] : memref<16x576xf32, #tpu.memory_space<vmem>>, vector<16x16xf32>
    tpu.vector_store %arg5[%c0_12, %c32], %7 {strides = array<i32>} : memref<16x576xf32, #tpu.memory_space<vmem>>, vector<16x16xf32>,
    %c0_13 = arith.constant 0 : index
    %c3 = arith.constant 3 : index
    %c0_14 = arith.constant 0 : index
    %c0_15 = arith.constant 0 : index
    %9 = vector.load %arg2[%c0_13, %c3, %c0_14, %c0_15] : memref<1x36x16x16xf32, #tpu.memory_space<vmem>>, vector<1x1x16x16xf32>
    %10 = vector.shape_cast %9 : vector<1x1x16x16xf32> to vector<16x16xf32>
    %c0_16 = arith.constant 0 : index
    %c48 = arith.constant 48 : index
    %11 = vector.load %arg5[%c0_16, %c48] : memref<16x576xf32, #tpu.memory_space<vmem>>, vector<16x16xf32>
    tpu.vector_store %arg5[%c0_16, %c48], %10 {strides = array<i32>} : memref<16x576xf32, #tpu.memory_space<vmem>>, vector<16x16xf32>,
    %c0_17 = arith.constant 0 : index
    %c4 = arith.constant 4 : index
    %c0_18 = arith.constant 0 : index
    %c0_19 = arith.constant 0 : index
    %12 = vector.load %arg2[%c0_17, %c4, %c0_18, %c0_19] : memref<1x36x16x16xf32, #tpu.memory_space<vmem>>, vector<1x1x16x16xf32>
    %13 = vector.shape_cast %12 : vector<1x1x16x16xf32> to vector<16x16xf32>
    %c0_20 = arith.constant 0 : index
    %c64 = arith.constant 64 : index
    %14 = vector.load %arg5[%c0_20, %c64] : memref<16x576xf32, #tpu.memory_space<vmem>>, vector<16x16xf32>
    tpu.vector_store %arg5[%c0_20, %c64], %13 {strides = array<i32>} : memref<16x576xf32, #tpu.memory_space<vmem>>, vector<16x16xf32>,
    %c0_21 = arith.constant 0 : index
    %c5 = arith.constant 5 : index
    %c0_22 = arith.constant 0 : index
    %c0_23 = arith.constant 0 : index
    %15 = vector.load %arg2[%c0_21, %c5, %c0_22, %c0_23] : memref<1x36x16x16xf32, #tpu.memory_space<vmem>>, vector<1x1x16x16xf32>
    %16 = vector.shape_cast %15 : vector<1x1x16x16xf32> to vector<16x16xf32>
    %c0_24 = arith.constant 0 : index
    %c80 = arith.constant 80 : index
    %17 = vector.load %arg5[%c0_24, %c80] : memref<16x576xf32, #tpu.memory_space<vmem>>, vector<16x16xf32>
    tpu.vector_store %arg5[%c0_24, %c80], %16 {strides = array<i32>} : memref<16x576xf32, #tpu.memory_space<vmem>>, vector<16x16xf32>,
    %c0_25 = arith.constant 0 : index
    %c6 = arith.constant 6 : index
    %c0_26 = arith.constant 0 : index
    %c0_27 = arith.constant 0 : index
    %18 = vector.load %arg2[%c0_25, %c6, %c0_26, %c0_27] : memref<1x36x16x16xf32, #tpu.memory_space<vmem>>, vector<1x1x16x16xf32>
    %19 = vector.shape_cast %18 : vector<1x1x16x16xf32> to vector<16x16xf32>
    %c0_28 = arith.constant 0 : index
    %c96 = arith.constant 96 : index
    %20 = vector.load %arg5[%c0_28, %c96] : memref<16x576xf32, #tpu.memory_space<vmem>>, vector<16x16xf32>
    tpu.vector_store %arg5[%c0_28, %c96], %19 {strides = array<i32>} : memref<16x576xf32, #tpu.memory_space<vmem>>, vector<16x16xf32>,
    %c0_29 = arith.constant 0 : index
    %c7 = arith.constant 7 : index
    %c0_30 = arith.constant 0 : index
    %c0_31 = arith.constant 0 : index
    %21 = vector.load %arg2[%c0_29, %c7, %c0_30, %c0_31] : memref<1x36x16x16xf32, #tpu.memory_space<vmem>>, vector<1x1x16x16xf32>
    %22 = vector.shape_cast %21 : vector<1x1x16x16xf32> to vector<16x16xf32>
    %c0_32 = arith.constant 0 : index
    %c112 = arith.constant 112 : index
    %23 = vector.load %arg5[%c0_32, %c112] : memref<16x576xf32, #tpu.memory_space<vmem>>, vector<16x16xf32>
    tpu.vector_store %arg5[%c0_32, %c112], %22 {strides = array<i32>} : memref<16x576xf32, #tpu.memory_space<vmem>>, vector<16x16xf32>,
    %c0_33 = arith.constant 0 : index
    %c8 = arith.constant 8 : index
    %c0_34 = arith.constant 0 : index
    %c0_35 = arith.constant 0 : index
    %24 = vector.load %arg2[%c0_33, %c8, %c0_34, %c0_35] : memref<1x36x16x16xf32, #tpu.memory_space<vmem>>, vector<1x1x16x16xf32>
    %25 = vector.shape_cast %24 : vector<1x1x16x16xf32> to vector<16x16xf32>
    %c0_36 = arith.constant 0 : index
    %c128 = arith.constant 128 : index
    %26 = vector.load %arg5[%c0_36, %c128] : memref<16x576xf32, #tpu.memory_space<vmem>>, vector<16x16xf32>
    tpu.vector_store %arg5[%c0_36, %c128], %25 {strides = array<i32>} : memref<16x576xf32, #tpu.memory_space<vmem>>, vector<16x16xf32>,
    %c0_37 = arith.constant 0 : index
    %c9 = arith.constant 9 : index
    %c0_38 = arith.constant 0 : index
    %c0_39 = arith.constant 0 : index
    %27 = vector.load %arg2[%c0_37, %c9, %c0_38, %c0_39] : memref<1x36x16x16xf32, #tpu.memory_space<vmem>>, vector<1x1x16x16xf32>
    %28 = vector.shape_cast %27 : vector<1x1x16x16xf32> to vector<16x16xf32>
    %c0_40 = arith.constant 0 : index
    %c144 = arith.constant 144 : index
    %29 = vector.load %arg5[%c0_40, %c144] : memref<16x576xf32, #tpu.memory_space<vmem>>, vector<16x16xf32>
    tpu.vector_store %arg5[%c0_40, %c144], %28 {strides = array<i32>} : memref<16x576xf32, #tpu.memory_space<vmem>>, vector<16x16xf32>,
    %c0_41 = arith.constant 0 : index
    %c10 = arith.constant 10 : index
    %c0_42 = arith.constant 0 : index
    %c0_43 = arith.constant 0 : index
    %30 = vector.load %arg2[%c0_41, %c10, %c0_42, %c0_43] : memref<1x36x16x16xf32, #tpu.memory_space<vmem>>, vector<1x1x16x16xf32>
    %31 = vector.shape_cast %30 : vector<1x1x16x16xf32> to vector<16x16xf32>
    %c0_44 = arith.constant 0 : index
    %c160 = arith.constant 160 : index
    %32 = vector.load %arg5[%c0_44, %c160] : memref<16x576xf32, #tpu.memory_space<vmem>>, vector<16x16xf32>
    tpu.vector_store %arg5[%c0_44, %c160], %31 {strides = array<i32>} : memref<16x576xf32, #tpu.memory_space<vmem>>, vector<16x16xf32>,
    %c0_45 = arith.constant 0 : index
    %c11 = arith.constant 11 : index
    %c0_46 = arith.constant 0 : index
    %c0_47 = arith.constant 0 : index
    %33 = vector.load %arg2[%c0_45, %c11, %c0_46, %c0_47] : memref<1x36x16x16xf32, #tpu.memory_space<vmem>>, vector<1x1x16x16xf32>
    %34 = vector.shape_cast %33 : vector<1x1x16x16xf32> to vector<16x16xf32>
    %c0_48 = arith.constant 0 : index
    %c176 = arith.constant 176 : index
    %35 = vector.load %arg5[%c0_48, %c176] : memref<16x576xf32, #tpu.memory_space<vmem>>, vector<16x16xf32>
    tpu.vector_store %arg5[%c0_48, %c176], %34 {strides = array<i32>} : memref<16x576xf32, #tpu.memory_space<vmem>>, vector<16x16xf32>,
    %c0_49 = arith.constant 0 : index
    %c12 = arith.constant 12 : index
    %c0_50 = arith.constant 0 : index
    %c0_51 = arith.constant 0 : index
    %36 = vector.load %arg2[%c0_49, %c12, %c0_50, %c0_51] : memref<1x36x16x16xf32, #tpu.memory_space<vmem>>, vector<1x1x16x16xf32>
    %37 = vector.shape_cast %36 : vector<1x1x16x16xf32> to vector<16x16xf32>
    %c0_52 = arith.constant 0 : index
    %c192 = arith.constant 192 : index
    %38 = vector.load %arg5[%c0_52, %c192] : memref<16x576xf32, #tpu.memory_space<vmem>>, vector<16x16xf32>
    tpu.vector_store %arg5[%c0_52, %c192], %37 {strides = array<i32>} : memref<16x576xf32, #tpu.memory_space<vmem>>, vector<16x16xf32>,
    %c0_53 = arith.constant 0 : index
    %c13 = arith.constant 13 : index
    %c0_54 = arith.constant 0 : index
    %c0_55 = arith.constant 0 : index
    %39 = vector.load %arg2[%c0_53, %c13, %c0_54, %c0_55] : memref<1x36x16x16xf32, #tpu.memory_space<vmem>>, vector<1x1x16x16xf32>
    %40 = vector.shape_cast %39 : vector<1x1x16x16xf32> to vector<16x16xf32>
    %c0_56 = arith.constant 0 : index
    %c208 = arith.constant 208 : index
    %41 = vector.load %arg5[%c0_56, %c208] : memref<16x576xf32, #tpu.memory_space<vmem>>, vector<16x16xf32>
    tpu.vector_store %arg5[%c0_56, %c208], %40 {strides = array<i32>} : memref<16x576xf32, #tpu.memory_space<vmem>>, vector<16x16xf32>,
    %c0_57 = arith.constant 0 : index
    %c14 = arith.constant 14 : index
    %c0_58 = arith.constant 0 : index
    %c0_59 = arith.constant 0 : index
    %42 = vector.load %arg2[%c0_57, %c14, %c0_58, %c0_59] : memref<1x36x16x16xf32, #tpu.memory_space<vmem>>, vector<1x1x16x16xf32>
    %43 = vector.shape_cast %42 : vector<1x1x16x16xf32> to vector<16x16xf32>
    %c0_60 = arith.constant 0 : index
    %c224 = arith.constant 224 : index
    %44 = vector.load %arg5[%c0_60, %c224] : memref<16x576xf32, #tpu.memory_space<vmem>>, vector<16x16xf32>
    tpu.vector_store %arg5[%c0_60, %c224], %43 {strides = array<i32>} : memref<16x576xf32, #tpu.memory_space<vmem>>, vector<16x16xf32>,
    %c0_61 = arith.constant 0 : index
    %c15 = arith.constant 15 : index
    %c0_62 = arith.constant 0 : index
    %c0_63 = arith.constant 0 : index
    %45 = vector.load %arg2[%c0_61, %c15, %c0_62, %c0_63] : memref<1x36x16x16xf32, #tpu.memory_space<vmem>>, vector<1x1x16x16xf32>
    %46 = vector.shape_cast %45 : vector<1x1x16x16xf32> to vector<16x16xf32>
    %c0_64 = arith.constant 0 : index
    %c240 = arith.constant 240 : index
    %47 = vector.load %arg5[%c0_64, %c240] : memref<16x576xf32, #tpu.memory_space<vmem>>, vector<16x16xf32>
    tpu.vector_store %arg5[%c0_64, %c240], %46 {strides = array<i32>} : memref<16x576xf32, #tpu.memory_space<vmem>>, vector<16x16xf32>,
    %c0_65 = arith.constant 0 : index
    %c16_66 = arith.constant 16 : index
    %c0_67 = arith.constant 0 : index
    %c0_68 = arith.constant 0 : index
    %48 = vector.load %arg2[%c0_65, %c16_66, %c0_67, %c0_68] : memref<1x36x16x16xf32, #tpu.memory_space<vmem>>, vector<1x1x16x16xf32>
    %49 = vector.shape_cast %48 : vector<1x1x16x16xf32> to vector<16x16xf32>
    %c0_69 = arith.constant 0 : index
    %c256 = arith.constant 256 : index
    %50 = vector.load %arg5[%c0_69, %c256] : memref<16x576xf32, #tpu.memory_space<vmem>>, vector<16x16xf32>
    tpu.vector_store %arg5[%c0_69, %c256], %49 {strides = array<i32>} : memref<16x576xf32, #tpu.memory_space<vmem>>, vector<16x16xf32>,
    %c0_70 = arith.constant 0 : index
    %c17 = arith.constant 17 : index
    %c0_71 = arith.constant 0 : index
    %c0_72 = arith.constant 0 : index
    %51 = vector.load %arg2[%c0_70, %c17, %c0_71, %c0_72] : memref<1x36x16x16xf32, #tpu.memory_space<vmem>>, vector<1x1x16x16xf32>
    %52 = vector.shape_cast %51 : vector<1x1x16x16xf32> to vector<16x16xf32>
    %c0_73 = arith.constant 0 : index
    %c272 = arith.constant 272 : index
    %53 = vector.load %arg5[%c0_73, %c272] : memref<16x576xf32, #tpu.memory_space<vmem>>, vector<16x16xf32>
    tpu.vector_store %arg5[%c0_73, %c272], %52 {strides = array<i32>} : memref<16x576xf32, #tpu.memory_space<vmem>>, vector<16x16xf32>,
    %c0_74 = arith.constant 0 : index
    %c18 = arith.constant 18 : index
    %c0_75 = arith.constant 0 : index
    %c0_76 = arith.constant 0 : index
    %54 = vector.load %arg2[%c0_74, %c18, %c0_75, %c0_76] : memref<1x36x16x16xf32, #tpu.memory_space<vmem>>, vector<1x1x16x16xf32>
    %55 = vector.shape_cast %54 : vector<1x1x16x16xf32> to vector<16x16xf32>
    %c0_77 = arith.constant 0 : index
    %c288 = arith.constant 288 : index
    %56 = vector.load %arg5[%c0_77, %c288] : memref<16x576xf32, #tpu.memory_space<vmem>>, vector<16x16xf32>
    tpu.vector_store %arg5[%c0_77, %c288], %55 {strides = array<i32>} : memref<16x576xf32, #tpu.memory_space<vmem>>, vector<16x16xf32>,
    %c0_78 = arith.constant 0 : index
    %c19 = arith.constant 19 : index
    %c0_79 = arith.constant 0 : index
    %c0_80 = arith.constant 0 : index
    %57 = vector.load %arg2[%c0_78, %c19, %c0_79, %c0_80] : memref<1x36x16x16xf32, #tpu.memory_space<vmem>>, vector<1x1x16x16xf32>
    %58 = vector.shape_cast %57 : vector<1x1x16x16xf32> to vector<16x16xf32>
    %c0_81 = arith.constant 0 : index
    %c304 = arith.constant 304 : index
    %59 = vector.load %arg5[%c0_81, %c304] : memref<16x576xf32, #tpu.memory_space<vmem>>, vector<16x16xf32>
    tpu.vector_store %arg5[%c0_81, %c304], %58 {strides = array<i32>} : memref<16x576xf32, #tpu.memory_space<vmem>>, vector<16x16xf32>,
    %c0_82 = arith.constant 0 : index
    %c20 = arith.constant 20 : index
    %c0_83 = arith.constant 0 : index
    %c0_84 = arith.constant 0 : index
    %60 = vector.load %arg2[%c0_82, %c20, %c0_83, %c0_84] : memref<1x36x16x16xf32, #tpu.memory_space<vmem>>, vector<1x1x16x16xf32>
    %61 = vector.shape_cast %60 : vector<1x1x16x16xf32> to vector<16x16xf32>
    %c0_85 = arith.constant 0 : index
    %c320 = arith.constant 320 : index
    %62 = vector.load %arg5[%c0_85, %c320] : memref<16x576xf32, #tpu.memory_space<vmem>>, vector<16x16xf32>
    tpu.vector_store %arg5[%c0_85, %c320], %61 {strides = array<i32>} : memref<16x576xf32, #tpu.memory_space<vmem>>, vector<16x16xf32>,
    %c0_86 = arith.constant 0 : index
    %c21 = arith.constant 21 : index
    %c0_87 = arith.constant 0 : index
    %c0_88 = arith.constant 0 : index
    %63 = vector.load %arg2[%c0_86, %c21, %c0_87, %c0_88] : memref<1x36x16x16xf32, #tpu.memory_space<vmem>>, vector<1x1x16x16xf32>
    %64 = vector.shape_cast %63 : vector<1x1x16x16xf32> to vector<16x16xf32>
    %c0_89 = arith.constant 0 : index
    %c336 = arith.constant 336 : index
    %65 = vector.load %arg5[%c0_89, %c336] : memref<16x576xf32, #tpu.memory_space<vmem>>, vector<16x16xf32>
    tpu.vector_store %arg5[%c0_89, %c336], %64 {strides = array<i32>} : memref<16x576xf32, #tpu.memory_space<vmem>>, vector<16x16xf32>,
    %c0_90 = arith.constant 0 : index
    %c22 = arith.constant 22 : index
    %c0_91 = arith.constant 0 : index
    %c0_92 = arith.constant 0 : index
    %66 = vector.load %arg2[%c0_90, %c22, %c0_91, %c0_92] : memref<1x36x16x16xf32, #tpu.memory_space<vmem>>, vector<1x1x16x16xf32>
    %67 = vector.shape_cast %66 : vector<1x1x16x16xf32> to vector<16x16xf32>
    %c0_93 = arith.constant 0 : index
    %c352 = arith.constant 352 : index
    %68 = vector.load %arg5[%c0_93, %c352] : memref<16x576xf32, #tpu.memory_space<vmem>>, vector<16x16xf32>
    tpu.vector_store %arg5[%c0_93, %c352], %67 {strides = array<i32>} : memref<16x576xf32, #tpu.memory_space<vmem>>, vector<16x16xf32>,
    %c0_94 = arith.constant 0 : index
    %c23 = arith.constant 23 : index
    %c0_95 = arith.constant 0 : index
    %c0_96 = arith.constant 0 : index
    %69 = vector.load %arg2[%c0_94, %c23, %c0_95, %c0_96] : memref<1x36x16x16xf32, #tpu.memory_space<vmem>>, vector<1x1x16x16xf32>
    %70 = vector.shape_cast %69 : vector<1x1x16x16xf32> to vector<16x16xf32>
    %c0_97 = arith.constant 0 : index
    %c368 = arith.constant 368 : index
    %71 = vector.load %arg5[%c0_97, %c368] : memref<16x576xf32, #tpu.memory_space<vmem>>, vector<16x16xf32>
    tpu.vector_store %arg5[%c0_97, %c368], %70 {strides = array<i32>} : memref<16x576xf32, #tpu.memory_space<vmem>>, vector<16x16xf32>,
    %c0_98 = arith.constant 0 : index
    %c24 = arith.constant 24 : index
    %c0_99 = arith.constant 0 : index
    %c0_100 = arith.constant 0 : index
    %72 = vector.load %arg2[%c0_98, %c24, %c0_99, %c0_100] : memref<1x36x16x16xf32, #tpu.memory_space<vmem>>, vector<1x1x16x16xf32>
    %73 = vector.shape_cast %72 : vector<1x1x16x16xf32> to vector<16x16xf32>
    %c0_101 = arith.constant 0 : index
    %c384 = arith.constant 384 : index
    %74 = vector.load %arg5[%c0_101, %c384] : memref<16x576xf32, #tpu.memory_space<vmem>>, vector<16x16xf32>
    tpu.vector_store %arg5[%c0_101, %c384], %73 {strides = array<i32>} : memref<16x576xf32, #tpu.memory_space<vmem>>, vector<16x16xf32>,
    %c0_102 = arith.constant 0 : index
    %c25 = arith.constant 25 : index
    %c0_103 = arith.constant 0 : index
    %c0_104 = arith.constant 0 : index
    %75 = vector.load %arg2[%c0_102, %c25, %c0_103, %c0_104] : memref<1x36x16x16xf32, #tpu.memory_space<vmem>>, vector<1x1x16x16xf32>
    %76 = vector.shape_cast %75 : vector<1x1x16x16xf32> to vector<16x16xf32>
    %c0_105 = arith.constant 0 : index
    %c400 = arith.constant 400 : index
    %77 = vector.load %arg5[%c0_105, %c400] : memref<16x576xf32, #tpu.memory_space<vmem>>, vector<16x16xf32>
    tpu.vector_store %arg5[%c0_105, %c400], %76 {strides = array<i32>} : memref<16x576xf32, #tpu.memory_space<vmem>>, vector<16x16xf32>,
    %c0_106 = arith.constant 0 : index
    %c26 = arith.constant 26 : index
    %c0_107 = arith.constant 0 : index
    %c0_108 = arith.constant 0 : index
    %78 = vector.load %arg2[%c0_106, %c26, %c0_107, %c0_108] : memref<1x36x16x16xf32, #tpu.memory_space<vmem>>, vector<1x1x16x16xf32>
    %79 = vector.shape_cast %78 : vector<1x1x16x16xf32> to vector<16x16xf32>
    %c0_109 = arith.constant 0 : index
    %c416 = arith.constant 416 : index
    %80 = vector.load %arg5[%c0_109, %c416] : memref<16x576xf32, #tpu.memory_space<vmem>>, vector<16x16xf32>
    tpu.vector_store %arg5[%c0_109, %c416], %79 {strides = array<i32>} : memref<16x576xf32, #tpu.memory_space<vmem>>, vector<16x16xf32>,
    %c0_110 = arith.constant 0 : index
    %c27 = arith.constant 27 : index
    %c0_111 = arith.constant 0 : index
    %c0_112 = arith.constant 0 : index
    %81 = vector.load %arg2[%c0_110, %c27, %c0_111, %c0_112] : memref<1x36x16x16xf32, #tpu.memory_space<vmem>>, vector<1x1x16x16xf32>
    %82 = vector.shape_cast %81 : vector<1x1x16x16xf32> to vector<16x16xf32>
    %c0_113 = arith.constant 0 : index
    %c432 = arith.constant 432 : index
    %83 = vector.load %arg5[%c0_113, %c432] : memref<16x576xf32, #tpu.memory_space<vmem>>, vector<16x16xf32>
    tpu.vector_store %arg5[%c0_113, %c432], %82 {strides = array<i32>} : memref<16x576xf32, #tpu.memory_space<vmem>>, vector<16x16xf32>,
    %c0_114 = arith.constant 0 : index
    %c28 = arith.constant 28 : index
    %c0_115 = arith.constant 0 : index
    %c0_116 = arith.constant 0 : index
    %84 = vector.load %arg2[%c0_114, %c28, %c0_115, %c0_116] : memref<1x36x16x16xf32, #tpu.memory_space<vmem>>, vector<1x1x16x16xf32>
    %85 = vector.shape_cast %84 : vector<1x1x16x16xf32> to vector<16x16xf32>
    %c0_117 = arith.constant 0 : index
    %c448 = arith.constant 448 : index
    %86 = vector.load %arg5[%c0_117, %c448] : memref<16x576xf32, #tpu.memory_space<vmem>>, vector<16x16xf32>
    tpu.vector_store %arg5[%c0_117, %c448], %85 {strides = array<i32>} : memref<16x576xf32, #tpu.memory_space<vmem>>, vector<16x16xf32>,
    %c0_118 = arith.constant 0 : index
    %c29 = arith.constant 29 : index
    %c0_119 = arith.constant 0 : index
    %c0_120 = arith.constant 0 : index
    %87 = vector.load %arg2[%c0_118, %c29, %c0_119, %c0_120] : memref<1x36x16x16xf32, #tpu.memory_space<vmem>>, vector<1x1x16x16xf32>
    %88 = vector.shape_cast %87 : vector<1x1x16x16xf32> to vector<16x16xf32>
    %c0_121 = arith.constant 0 : index
    %c464 = arith.constant 464 : index
    %89 = vector.load %arg5[%c0_121, %c464] : memref<16x576xf32, #tpu.memory_space<vmem>>, vector<16x16xf32>
    tpu.vector_store %arg5[%c0_121, %c464], %88 {strides = array<i32>} : memref<16x576xf32, #tpu.memory_space<vmem>>, vector<16x16xf32>,
    %c0_122 = arith.constant 0 : index
    %c30 = arith.constant 30 : index
    %c0_123 = arith.constant 0 : index
    %c0_124 = arith.constant 0 : index
    %90 = vector.load %arg2[%c0_122, %c30, %c0_123, %c0_124] : memref<1x36x16x16xf32, #tpu.memory_space<vmem>>, vector<1x1x16x16xf32>
    %91 = vector.shape_cast %90 : vector<1x1x16x16xf32> to vector<16x16xf32>
    %c0_125 = arith.constant 0 : index
    %c480 = arith.constant 480 : index
    %92 = vector.load %arg5[%c0_125, %c480] : memref<16x576xf32, #tpu.memory_space<vmem>>, vector<16x16xf32>
    tpu.vector_store %arg5[%c0_125, %c480], %91 {strides = array<i32>} : memref<16x576xf32, #tpu.memory_space<vmem>>, vector<16x16xf32>,
    %c0_126 = arith.constant 0 : index
    %c31 = arith.constant 31 : index
    %c0_127 = arith.constant 0 : index
    %c0_128 = arith.constant 0 : index
    %93 = vector.load %arg2[%c0_126, %c31, %c0_127, %c0_128] : memref<1x36x16x16xf32, #tpu.memory_space<vmem>>, vector<1x1x16x16xf32>
    %94 = vector.shape_cast %93 : vector<1x1x16x16xf32> to vector<16x16xf32>
    %c0_129 = arith.constant 0 : index
    %c496 = arith.constant 496 : index
    %95 = vector.load %arg5[%c0_129, %c496] : memref<16x576xf32, #tpu.memory_space<vmem>>, vector<16x16xf32>
    tpu.vector_store %arg5[%c0_129, %c496], %94 {strides = array<i32>} : memref<16x576xf32, #tpu.memory_space<vmem>>, vector<16x16xf32>,
    %c0_130 = arith.constant 0 : index
    %c32_131 = arith.constant 32 : index
    %c0_132 = arith.constant 0 : index
    %c0_133 = arith.constant 0 : index
    %96 = vector.load %arg2[%c0_130, %c32_131, %c0_132, %c0_133] : memref<1x36x16x16xf32, #tpu.memory_space<vmem>>, vector<1x1x16x16xf32>
    %97 = vector.shape_cast %96 : vector<1x1x16x16xf32> to vector<16x16xf32>
    %c0_134 = arith.constant 0 : index
    %c512 = arith.constant 512 : index
    %98 = vector.load %arg5[%c0_134, %c512] : memref<16x576xf32, #tpu.memory_space<vmem>>, vector<16x16xf32>
    tpu.vector_store %arg5[%c0_134, %c512], %97 {strides = array<i32>} : memref<16x576xf32, #tpu.memory_space<vmem>>, vector<16x16xf32>,
    %c0_135 = arith.constant 0 : index
    %c33 = arith.constant 33 : index
    %c0_136 = arith.constant 0 : index
    %c0_137 = arith.constant 0 : index
    %99 = vector.load %arg2[%c0_135, %c33, %c0_136, %c0_137] : memref<1x36x16x16xf32, #tpu.memory_space<vmem>>, vector<1x1x16x16xf32>
    %100 = vector.shape_cast %99 : vector<1x1x16x16xf32> to vector<16x16xf32>
    %c0_138 = arith.constant 0 : index
    %c528 = arith.constant 528 : index
    %101 = vector.load %arg5[%c0_138, %c528] : memref<16x576xf32, #tpu.memory_space<vmem>>, vector<16x16xf32>
    tpu.vector_store %arg5[%c0_138, %c528], %100 {strides = array<i32>} : memref<16x576xf32, #tpu.memory_space<vmem>>, vector<16x16xf32>,
    %c0_139 = arith.constant 0 : index
    %c34 = arith.constant 34 : index
    %c0_140 = arith.constant 0 : index
    %c0_141 = arith.constant 0 : index
    %102 = vector.load %arg2[%c0_139, %c34, %c0_140, %c0_141] : memref<1x36x16x16xf32, #tpu.memory_space<vmem>>, vector<1x1x16x16xf32>
    %103 = vector.shape_cast %102 : vector<1x1x16x16xf32> to vector<16x16xf32>
    %c0_142 = arith.constant 0 : index
    %c544 = arith.constant 544 : index
    %104 = vector.load %arg5[%c0_142, %c544] : memref<16x576xf32, #tpu.memory_space<vmem>>, vector<16x16xf32>
    tpu.vector_store %arg5[%c0_142, %c544], %103 {strides = array<i32>} : memref<16x576xf32, #tpu.memory_space<vmem>>, vector<16x16xf32>,
    %c0_143 = arith.constant 0 : index
    %c35 = arith.constant 35 : index
    %c0_144 = arith.constant 0 : index
    %c0_145 = arith.constant 0 : index
    %105 = vector.load %arg2[%c0_143, %c35, %c0_144, %c0_145] : memref<1x36x16x16xf32, #tpu.memory_space<vmem>>, vector<1x1x16x16xf32>
    %106 = vector.shape_cast %105 : vector<1x1x16x16xf32> to vector<16x16xf32>
    %c0_146 = arith.constant 0 : index
    %c560 = arith.constant 560 : index
    %107 = vector.load %arg5[%c0_146, %c560] : memref<16x576xf32, #tpu.memory_space<vmem>>, vector<16x16xf32>
    tpu.vector_store %arg5[%c0_146, %c560], %106 {strides = array<i32>} : memref<16x576xf32, #tpu.memory_space<vmem>>, vector<16x16xf32>,
    %c0_147 = arith.constant 0 : index
    %c0_148 = arith.constant 0 : index
    %108 = vector.load %arg5[%c0_147, %c0_148] : memref<16x576xf32, #tpu.memory_space<vmem>>, vector<16x576xf32>
    %109 = arith.truncf %108 : vector<16x576xf32> to vector<16x576xbf16>
    %c0_149 = arith.constant 0 : index
    %c0_150 = arith.constant 0 : index
    %110 = vector.load %arg3[%c0_149, %c0_150] : memref<576x128xbf16, #tpu.memory_space<vmem>>, vector<576x128xbf16>
    %cst = arith.constant dense<0.000000e+00> : vector<16x128xf32>
    %111 = tpu.matmul %109, %110, %cst {dimension_numbers = #tpu.dot_dimension_numbers<[1], [0], [0], [1], [0, 0, 1, 1], [], []>} : vector<16x576xbf16>, vector<576x128xbf16>, vector<16x128xf32> -> vector<16x128xf32>
    %c0_151 = arith.constant 0 : index
    %c0_152 = arith.constant 0 : index
    %c0_153 = arith.constant 0 : index
    %112 = vector.load %arg4[%c0_151, %c0_152, %c0_153] : memref<1x16x128xf32, #tpu.memory_space<vmem>>, vector<1x16x128xf32>
    %113 = vector.shape_cast %112 : vector<1x16x128xf32> to vector<16x128xf32>
    %114 = vector.shape_cast %111 : vector<16x128xf32> to vector<1x16x128xf32>
    tpu.vector_store %arg4[%c0_151, %c0_152, %c0_153], %114 {strides = array<i32>} : memref<1x16x128xf32, #tpu.memory_space<vmem>>, vector<1x16x128xf32>,
    return
  }
  func.func @transform_0(%arg0: i32, %arg1: i32) -> (i32, i32, i32, i32) {
    %c0_i32 = arith.constant 0 : i32
    %c0_i32_0 = arith.constant 0 : i32
    %c0_i32_1 = arith.constant 0 : i32
    return %arg0, %c0_i32, %arg1, %c0_i32_0 : i32, i32, i32, i32
  }
  func.func @transform_1(%arg0: i32, %arg1: i32) -> (i32, i32) {
    %c0_i32 = arith.constant 0 : i32
    %c0_i32_0 = arith.constant 0 : i32
    %c0_i32_1 = arith.constant 0 : i32
    return %c0_i32, %c0_i32_0 : i32, i32
  }
  func.func @transform_2(%arg0: i32, %arg1: i32) -> (i32, i32, i32) {
    %c0_i32 = arith.constant 0 : i32
    %c0_i32_0 = arith.constant 0 : i32
    return %arg0, %arg1, %c0_i32 : i32, i32, i32
  }
}

</mosaic_0001>

<bundles_post_ra>
// kernel: bilinear_routing_forward.1
= control target key start
LH: loop header
LB: loop body
LE: loop exit
PB: predicated region body
PF: predicated region fallthrough
CT: control target
= control target key end

     0   :  { %s1435_s9 = smov 0   ;;  %s1437_s10 = smov 0   ;;  %s1793_s0 = inlined_call_operand.vmem [shape: f32[2,36,16,16], index: 0, kind: input, shape index: {}]   ;;  %s1794_s1 = inlined_call_operand.vmem [shape: bf16[576,128], index: 1, kind: input, shape index: {}]   ;;  %s1795_s2 = inlined_call_operand.vmem [shape: f32[2,16,128], index: 2, kind: output, shape index: {}]  }
   0x1   :  { %s1439_s11 = smov 0  }
   0x2 LB: > { %s24_s12 = sadd.s32 1, %s1405_s10  ;;  %p1142_p0 = scmp.ge.s32.totalorder %s1409_s11, 1  ;;  %s1409_s11 = sphi %s1439_s11, %s12_s11   ;;  %s1405_s10 = sphi %s1437_s10, %s1797_s10   ;;  %s1401_s9 = sphi %s1435_s9, %s1796_s9  }
   0x3   : > { %p26_p1 = scmp.ge.s32.totalorder %s24_s12, 2  ;;  %p133_p2 = scmp.lt.s32.totalorder %s1409_s11, 3 }
   0x5   : > { %s1799_s12 = smov (%p26_p1, %s24_s12), 0  ;;  %p134_p3 = pnand %p1142_p0, %p133_p2 }
   0x6   : > { %p164_p4 = scmp.lt.s32.totalorder (!%p134_p3), %s1401_s9, 1  ;;  %s1411_s17 = smov (!%p134_p3), 16   ;;  %vm186_vm0 = vcmask (!%p134_p3), 130048   ;;  %v1351_v18 = vld [vmem:[%s1794_s1 + $0x40] sm:$0xff] (!%p134_p3)   ;;  %v1353_v20 = vld [vmem:[%s1794_s1 + $0x48] sm:$0xff] (!%p134_p3)   ;;  %v1355_v26 = vld [vmem:[%s1794_s1 + $0x50] sm:$0xff] (!%p134_p3)  }
   0x7   : > { %137 = sbr.rel (%p134_p3) target bundleno = 482 (0x1e2), region = 28  ;;  %s1412_s18 = smov (!%p134_p3), 32   ;;  %v1352_v19 = vld [vmem:[%s1794_s1] sm:$0xff] (!%p134_p3)   ;;  %1256 = vmatprep.subr.bf16.mxu0 (!%p134_p3), %v1351_v18  ;;  %v1354_v23 = vld [vmem:[%s1794_s1 + $0x8] sm:$0xff] (!%p134_p3)   ;;  %v1356_v27 = vld [vmem:[%s1794_s1 + $0x10] sm:$0xff] (!%p134_p3)   ;;  %vm200_vm1 = vcmask (!%p134_p3), 261248  }
   0x8   : > { %s1413_s19 = smov (!%p134_p3), 48   ;;  %s1414_s26 = smov (!%p134_p3), 64   ;;  %1257 = vmatpush3.bf16.msra.mxu0 (!%p134_p3), %v1352_v19  ;;  %v1357_v30 = vld [vmem:[%s1794_s1 + $0x58] sm:$0xff] (!%p134_p3)   ;;  %v1359_v34 = vld [vmem:[%s1794_s1 + $0x60] sm:$0xff] (!%p134_p3)   ;;  %v1361_v38 = vld [vmem:[%s1794_s1 + $0x68] sm:$0xff] (!%p134_p3)   ;;  %vm214_vm2 = vcmask (!%p134_p3), 392448  }
   0x9   : > { %1258 = vmatprep.subr.bf16.mxu0 (!%p134_p3), %v1353_v20  ;;  %s1415_s7 = smov (!%p134_p3), 80   ;;  %v1358_v31 = vld [vmem:[%s1794_s1 + $0x18] sm:$0xff] (!%p134_p3)   ;;  %v1360_v35 = vld [vmem:[%s1794_s1 + $0x20] sm:$0xff] (!%p134_p3)   ;;  %s1416_s24 = smov (!%p134_p3), 96   ;;  %v1362_v40 = vld [vmem:[%s1794_s1 + $0x28] sm:$0xff] (!%p134_p3)   ;;  %vm228_vm3 = vcmask (!%p134_p3), 523648  }
   0xa   : > { %v1363_v44 = vld [vmem:[%s1794_s1 + $0x70] sm:$0xff] (!%p134_p3)   ;;  %v1365_v46 = vld [vmem:[%s1794_s1 + $0x78] sm:$0xff] (!%p134_p3)   ;;  %s1417_s6 = smov (!%p134_p3), 112   ;;  %v1367_v62 = vld [vmem:[%s1794_s1 + $0xc0] sm:$0xff] (!%p134_p3)   ;;  %vm242_vm4 = vcmask (!%p134_p3), 654848   ;;  %vm256_vm5 = vcmask (!%p134_p3), 786048  }
   0xb   : > { %v1364_v45 = vld [vmem:[%s1794_s1 + $0x30] sm:$0xff] (!%p134_p3)   ;;  %v1366_v51 = vld [vmem:[%s1794_s1 + $0x38] sm:$0xff] (!%p134_p3)   ;;  %v1368_v63 = vld [vmem:[%s1794_s1 + $0x80] sm:$0xff] (!%p134_p3)   ;;  %1278 = vmatprep.subr.bf16.mxu1 (!%p134_p3), %v1367_v62  ;;  %vm270_vm6 = vcmask (!%p134_p3), 917248   ;;  %vm284_vm7 = vcmask (!%p134_p3), 1048448   ;;  %vm1419_vm8 = vmmov (!%p134_p3), 0  }
   0xc   : > { %1259 = vmatpush3.bf16.msra.mxu0 (!%p134_p3), %v1354_v23  ;;  %1279 = vmatpush3.bf16.msra.mxu1 (!%p134_p3), %v1368_v63  ;;  %v1377_v18 = vld [vmem:[%s1794_s1 + $0xe8] sm:$0xff] (!%p134_p3)   ;;  %v1380_v23 = vld [vmem:[%s1794_s1 + $0xb0] sm:$0xff] (!%p134_p3)   ;;  %vm922_vm9 = vcmask (!%p134_p3), 523264  }
   0xd   : > { %1260 = vmatprep.subr.bf16.mxu0 (!%p134_p3), %v1355_v26  ;;  %v1378_v19 = vld [vmem:[%s1794_s1 + $0xa8] sm:$0xff] (!%p134_p3)  }
   0xe   : > { %s1801_s9 = smov (!%p164_p4, %s1401_s9), 1 }
   0xf   : > { %s1317_s13 = smul.u32 576, %s1801_s9  ;;  %s1255_s14 = sshll.u32 %s1801_s9, 4 }
  0x10   : > { %1261 = vmatpush3.bf16.msra.mxu0 %v1356_v27  ;;  %s181_s21 = scalar_lea.vmem %s1795_s2, %s1255_s14 }
  0x11   : > { %s1459_s16 = scalar_lea.vmem %s1793_s0, %s1317_s13  ;;  %1262 = vmatprep.subr.bf16.mxu0 %v1357_v30 }
  0x12   : > { %v1162_v0 = vld [vmem:[%s1459_s16 + $0x90] sm:$0xff]  ;;  %v1163_v2 = vld [vmem:[%s1459_s16 + $0x98] sm:$0xff]  ;;  %v1164_v4 = vld [vmem:[%s1459_s16 + $0xa0] sm:$0xff] }
  0x13   : > { %v1146_v1 = vld [vmem:[%s1459_s16 + $0x10] sm:$0xff]  ;;  %297 = vrot.lane.b32.xlu0 %v1162_v0, %s1411_s17  ;;  %v1147_v3 = vld [vmem:[%s1459_s16 + $0x18] sm:$0xff]  ;;  %v1165_v5 = vld [vmem:[%s1459_s16 + $0xa8] sm:$0xff] }
  0x14   : > { %194 = vrot.lane.b32.xlu1 %v1146_v1, %s1411_s17  ;;  %v1148_v6 = vld [vmem:[%s1459_s16 + $0x20] sm:$0xff]  ;;  %v1149_v7 = vld [vmem:[%s1459_s16 + $0x28] sm:$0xff]  ;;  %v1166_v8 = vld [vmem:[%s1459_s16 + $0xb0] sm:$0xff]  ;;  %1263 = vmatpush3.bf16.msra.mxu0 %v1358_v31 }
  0x15   : > { %v1167_v9 = vld [vmem:[%s1459_s16 + $0xb8] sm:$0xff]  ;;  %v1150_v10 = vld [vmem:[%s1459_s16 + $0x30] sm:$0xff]  ;;  %v1160_v12 = vld [vmem:[%s1459_s16 + $0x80] sm:$0xff]  ;;  %1264 = vmatprep.subr.bf16.mxu0 %v1359_v34 }
  0x16   : > { %v1151_v11 = vld [vmem:[%s1459_s16 + $0x38] sm:$0xff]  ;;  %v184_v13 = vld [vmem:[%s1459_s16] sm:$0xff]  ;;  %v1169_v15 = vld [vmem:[%s1459_s16 + $0xc8] sm:$0xff]  ;;  %290 = vst.msk [vmem:[#allocation2 + $0x8] sm:$0xff] %vm186_vm0, %v1160_v12 }
  0x17   : > { %299 = vrot.lane.b32.xlu0 %v1163_v2, %s1411_s17  ;;  %v1168_v14 = vld [vmem:[%s1459_s16 + $0xc0] sm:$0xff]  ;;  %187 = vst.msk [vmem:[#allocation2] sm:$0xff] %vm186_vm0, %v184_v13  ;;  %v1161_v16 = vld [vmem:[%s1459_s16 + $0x88] sm:$0xff]  ;;  %v1170_v24 = vld [vmem:[%s1459_s16 + $0xd0] sm:$0xff] }
  0x18   : > { %196 = vrot.lane.b32.xlu1 %v1147_v3, %s1411_s17  ;;  %291 = vst.msk [vmem:[#allocation2 + $0x30] sm:$0xff] %vm186_vm0, %v1161_v16  ;;  %v185_v17 = vld [vmem:[%s1459_s16 + $0x8] sm:$0xff]  ;;  %v1152_v21 = vld [vmem:[%s1459_s16 + $0x40] sm:$0xff]  ;;  %v1171_v25 = vld [vmem:[%s1459_s16 + $0xd8] sm:$0xff]  ;;  %1265 = vmatpush3.bf16.msra.mxu0 %v1360_v35 }
  0x19   : > { %188 = vst.msk [vmem:[#allocation2 + $0x28] sm:$0xff] %vm186_vm0, %v185_v17  ;;  %v1153_v22 = vld [vmem:[%s1459_s16 + $0x48] sm:$0xff]  ;;  %v1154_v28 = vld [vmem:[%s1459_s16 + $0x50] sm:$0xff]  ;;  %v1155_v29 = vld [vmem:[%s1459_s16 + $0x58] sm:$0xff]  ;;  %1266 = vmatprep.subr.bf16.mxu0 %v1361_v38 }
  0x1a   : > { %v1172_v32 = vld [vmem:[%s1459_s16 + $0xe0] sm:$0xff]  ;;  %v1173_v33 = vld [vmem:[%s1459_s16 + $0xe8] sm:$0xff]  ;;  %v1174_v42 = vld [vmem:[%s1459_s16 + $0xf0] sm:$0xff] }
  0x1b   : > { %310 = vrot.lane.b32.xlu0 %v1164_v4, %s1412_s18  ;;  %v1156_v36 = vld [vmem:[%s1459_s16 + $0x60] sm:$0xff]  ;;  %v1157_v37 = vld [vmem:[%s1459_s16 + $0x68] sm:$0xff]  ;;  %v1175_v43 = vld [vmem:[%s1459_s16 + $0xf8] sm:$0xff] }
  0x1c   : > { %312 = vrot.lane.b32.xlu1 %v1165_v5, %s1412_s18  ;;  %v1192_v39 = vld [vmem:[%s1459_s16 + $0x180] sm:$0xff]  ;;  %v1193_v41 = vld [vmem:[%s1459_s16 + $0x188] sm:$0xff]  ;;  %1267 = vmatpush3.bf16.msra.mxu0 %v1362_v40  ;;  %v1158_v49 = vld [vmem:[%s1459_s16 + $0x70] sm:$0xff] }
  0x1d   : > { %482 = vst.msk [vmem:[#allocation2 + $0x18] sm:$0xff] %vm186_vm0, %v1192_v39  ;;  %483 = vst.msk [vmem:[#allocation2 + $0x40] sm:$0xff] %vm186_vm0, %v1193_v41  ;;  %v1176_v47 = vld [vmem:[%s1459_s16 + $0x100] sm:$0xff]  ;;  %v1177_v48 = vld [vmem:[%s1459_s16 + $0x108] sm:$0xff]  ;;  %1268 = vmatprep.subr.bf16.mxu0 %v1363_v44 }
  0x1e   : > { %386 = vst.msk [vmem:[#allocation2 + $0x10] sm:$0xff] %vm186_vm0, %v1176_v47  ;;  %387 = vst.msk [vmem:[#allocation2 + $0x38] sm:$0xff] %vm186_vm0, %v1177_v48  ;;  %v1159_v50 = vld [vmem:[%s1459_s16 + $0x78] sm:$0xff]  ;;  %v1194_v52 = vld [vmem:[%s1459_s16 + $0x190] sm:$0xff] }
  0x1f   : > { %208 = vrot.lane.b32.xlu0 %v1148_v6, %s1412_s18  ;;  %v1195_v53 = vld [vmem:[%s1459_s16 + $0x198] sm:$0xff]  ;;  %v1178_v54 = vld [vmem:[%s1459_s16 + $0x110] sm:$0xff]  ;;  %v1196_v56 = vld [vmem:[%s1459_s16 + $0x1a0] sm:$0xff] }
  0x20   : > { %210 = vrot.lane.b32.xlu1 %v1149_v7, %s1412_s18  ;;  %1269 = vmatpush3.bf16.msra.mxu0 %v1364_v45  ;;  %v1179_v55 = vld [vmem:[%s1459_s16 + $0x118] sm:$0xff]  ;;  %v1197_v57 = vld [vmem:[%s1459_s16 + $0x1a8] sm:$0xff]  ;;  %v1180_v58 = vld [vmem:[%s1459_s16 + $0x120] sm:$0xff] }
  0x21   : > { %1270 = vmatprep.subr.bf16.mxu0 %v1365_v46  ;;  %v1181_v59 = vld [vmem:[%s1459_s16 + $0x128] sm:$0xff]  ;;  %v1198_v60 = vld [vmem:[%s1459_s16 + $0x1b0] sm:$0xff]  ;;  %v1199_v61 = vld [vmem:[%s1459_s16 + $0x1b8] sm:$0xff] }
  0x22   : > { %v1182_v0 = vld [vmem:[%s1459_s16 + $0x130] sm:$0xff]  ;;  %v1183_v1 = vld [vmem:[%s1459_s16 + $0x138] sm:$0xff]  ;;  %v1369_v2 = vld [vmem:[%s1794_s1 + $0xc8] sm:$0xff]  }
  0x23   : > { %323 = vrot.lane.b32.xlu0 %v1166_v8, %s1413_s19  ;;  %v1370_v3 = vld [vmem:[%s1794_s1 + $0x88] sm:$0xff]   ;;  %v1200_v4 = vld [vmem:[%s1459_s16 + $0x1c0] sm:$0xff]  ;;  %1280 = vmatprep.subr.bf16.mxu1 %v1369_v2  ;;  %v1371_v6 = vld [vmem:[%s1794_s1 + $0xd0] sm:$0xff]  }
  0x24   : > { %325 = vrot.lane.b32.xlu1 %v1167_v9, %s1413_s19  ;;  %1271 = vmatpush3.bf16.msra.mxu0 %v1366_v51  ;;  %v1201_v5 = vld [vmem:[%s1459_s16 + $0x1c8] sm:$0xff]  ;;  %v1372_v7 = vld [vmem:[%s1794_s1 + $0x90] sm:$0xff]   ;;  %v1184_v8 = vld [vmem:[%s1459_s16 + $0x140] sm:$0xff] }
  0x25   : > { %1281 = vmatpush3.bf16.msra.mxu1 %v1370_v3  ;;  %v1185_v9 = vld [vmem:[%s1459_s16 + $0x148] sm:$0xff]  ;;  %v1202_v12 = vld [vmem:[%s1459_s16 + $0x1d0] sm:$0xff]  ;;  %v1203_v13 = vld [vmem:[%s1459_s16 + $0x1d8] sm:$0xff] }
  0x26   : > { %1282 = vmatprep.subr.bf16.mxu1 %v1371_v6  ;;  %v1186_v16 = vld [vmem:[%s1459_s16 + $0x150] sm:$0xff]  ;;  %v1187_v17 = vld [vmem:[%s1459_s16 + $0x158] sm:$0xff]  ;;  %v1204_v20 = vld [vmem:[%s1459_s16 + $0x1e0] sm:$0xff] }
  0x27   : > { %222 = vrot.lane.b32.xlu0 %v1150_v10, %s1413_s19  ;;  %v1373_v10 = vld [vmem:[%s1794_s1 + $0xd8] sm:$0xff]   ;;  %v1189_v26 = vld [vmem:[%s1459_s16 + $0x168] sm:$0xff]  ;;  %v1206_v30 = vld [vmem:[%s1459_s16 + $0x1f0] sm:$0xff] }
  0x28   : > { %224 = vrot.lane.b32.xlu1 %v1151_v11, %s1413_s19  ;;  %v1374_v11 = vld [vmem:[%s1794_s1 + $0x98] sm:$0xff]   ;;  %v1209_v27 = vld [vmem:[%s1459_s16 + $0x208] sm:$0xff]  ;;  %v1210_v35 = vld [vmem:[%s1459_s16 + $0x210] sm:$0xff] }
  0x29   : > { %1283 = vmatpush3.bf16.msra.mxu1 %v1372_v7  ;;  %579 = vst.msk [vmem:[#allocation2 + $0x48] sm:$0xff] %vm186_vm0, %v1209_v27  ;;  %v1207_v31 = vld [vmem:[%s1459_s16 + $0x1f8] sm:$0xff]  ;;  %v1213_v38 = vld [vmem:[%s1459_s16 + $0x228] sm:$0xff]  ;;  %v1214_v41 = vld [vmem:[%s1459_s16 + $0x230] sm:$0xff] }
  0x2a   : > { %1284 = vmatprep.subr.bf16.mxu1 %v1373_v10  ;;  %v1191_v34 = vld [vmem:[%s1459_s16 + $0x178] sm:$0xff] }
  0x2b   : > { %336 = vrot.lane.b32.xlu0 %v1168_v14, %s1414_s26  ;;  %v1375_v14 = vld [vmem:[%s1794_s1 + $0xe0] sm:$0xff]  }
  0x2c   : > { %338 = vrot.lane.b32.xlu1 %v1169_v15, %s1414_s26  ;;  %v1376_v15 = vld [vmem:[%s1794_s1 + $0xa0] sm:$0xff]  }
  0x2d   : > { %1285 = vmatpush3.bf16.msra.mxu1 %v1374_v11 }
  0x2e   : > { %1286 = vmatprep.subr.bf16.mxu1 %v1375_v14  ;;  %v1383_v14 = vld [vmem:[%s1794_s1 + $0x100] sm:$0xff]  }
  0x2f   : > { %236 = vrot.lane.b32.xlu0 %v1152_v21, %s1414_s26  ;;  %v1205_v21 = vld [vmem:[%s1459_s16 + $0x1e8] sm:$0xff] }
  0x30   : > { %238 = vrot.lane.b32.xlu1 %v1153_v22, %s1414_s26  ;;  %v1379_v22 = vld [vmem:[%s1794_s1 + $0xf0] sm:$0xff]  }
  0x31   : > { %1287 = vmatpush3.bf16.msra.mxu1 %v1376_v15 }
  0x32   : > { %1288 = vmatprep.subr.bf16.mxu1 %v1377_v18  ;;  %v1384_v18 = vld [vmem:[%s1794_s1 + $0x108] sm:$0xff]  }
  0x33   : > { %349 = vrot.lane.b32.xlu0 %v1170_v24, %s1415_s7  ;;  %v1208_v24 = vld [vmem:[%s1459_s16 + $0x200] sm:$0xff] }
  0x34   : > { %351 = vrot.lane.b32.xlu1 %v1171_v25, %s1415_s7  ;;  %578 = vst.msk [vmem:[#allocation2 + $0x20] sm:$0xff] %vm186_vm0, %v1208_v24  ;;  %v1188_v25 = vld [vmem:[%s1459_s16 + $0x160] sm:$0xff]  ;;  %v1386_v24 = vld [vmem:[%s1794_s1 + $0x118] sm:$0xff]  }
  0x35   : > { %1289 = vmatpush3.bf16.msra.mxu1 %v1378_v19 }
  0x36   : > { %1290 = vmatprep.subr.bf16.mxu1 %v1379_v22 }
  0x37   : > { %250 = vrot.lane.b32.xlu0 %v1154_v28, %s1415_s7  ;;  %v1381_v28 = vld [vmem:[%s1794_s1 + $0xf8] sm:$0xff]  }
  0x38   : > { %252 = vrot.lane.b32.xlu1 %v1155_v29, %s1415_s7  ;;  %v1382_v29 = vld [vmem:[%s1794_s1 + $0xb8] sm:$0xff]  }
  0x39   : > { %1291 = vmatpush3.bf16.msra.mxu1 %v1380_v23 }
  0x3a   : > { %1292 = vmatprep.subr.bf16.mxu1 %v1381_v28 }
  0x3b   : > { %362 = vrot.lane.b32.xlu0 %v1172_v32, %s1416_s24  ;;  %v1418_v32 = vmov 0.0  }
  0x3c   : > { %364 = vrot.lane.b32.xlu1 %v1173_v33, %s1416_s24  ;;  %1305 = vmatprep.subr.bf16.mxu0 %v1418_v32  ;;  %v1190_v33 = vld [vmem:[%s1459_s16 + $0x170] sm:$0xff] }
  0x3d   : > { %1293 = vmatpush3.bf16.msra.mxu1 %v1382_v29 }
  0x3f   : > { %264 = vrot.lane.b32.xlu0 %v1156_v36, %s1416_s24  ;;  %v1211_v36 = vld [vmem:[%s1459_s16 + $0x218] sm:$0xff] }
  0x40   : > { %266 = vrot.lane.b32.xlu1 %v1157_v37, %s1416_s24  ;;  %v1212_v37 = vld [vmem:[%s1459_s16 + $0x220] sm:$0xff] }
  0x43   : > { %375 = vrot.lane.b32.xlu0 %v1174_v42, %s1417_s6  ;;  %v1215_v42 = vld [vmem:[%s1459_s16 + $0x238] sm:$0xff] }
  0x44   : > { %377 = vrot.lane.b32.xlu1 %v1175_v43, %s1417_s6 }
  0x47   : > { %278 = vrot.lane.b32.xlu0 %v1158_v49, %s1417_s6 }
  0x48   : > { %280 = vrot.lane.b32.xlu1 %v1159_v50, %s1417_s6 }
  0x4b   : > { %489 = vrot.lane.b32.xlu0 %v1194_v52, %s1411_s17 }
  0x4c   : > { %491 = vrot.lane.b32.xlu1 %v1195_v53, %s1411_s17 }
  0x4f   : > { %393 = vrot.lane.b32.xlu0 %v1178_v54, %s1411_s17 }
  0x50   : > { %395 = vrot.lane.b32.xlu1 %v1179_v55, %s1411_s17 }
  0x53   : > { %502 = vrot.lane.b32.xlu0 %v1196_v56, %s1412_s18 }
  0x54   : > { %504 = vrot.lane.b32.xlu1 %v1197_v57, %s1412_s18 }
  0x57   : > { %406 = vrot.lane.b32.xlu0 %v1180_v58, %s1412_s18 }
  0x58   : > { %408 = vrot.lane.b32.xlu1 %v1181_v59, %s1412_s18 }
  0x5b   : > { %515 = vrot.lane.b32.xlu0 %v1198_v60, %s1413_s19 }
  0x5c   : > { %517 = vrot.lane.b32.xlu1 %v1199_v61, %s1413_s19 }
  0x5f   : > { %419 = vrot.lane.b32.xlu0 %v1182_v0, %s1413_s19 }
  0x60   : > { %421 = vrot.lane.b32.xlu1 %v1183_v1, %s1413_s19 }
  0x63   : > { %528 = vrot.lane.b32.xlu0 %v1200_v4, %s1414_s26 }
  0x64   : > { %530 = vrot.lane.b32.xlu1 %v1201_v5, %s1414_s26 }
  0x67   : > { %432 = vrot.lane.b32.xlu0 %v1184_v8, %s1414_s26 }
  0x68   : > { %434 = vrot.lane.b32.xlu1 %v1185_v9, %s1414_s26 }
  0x6b   : > { %541 = vrot.lane.b32.xlu0 %v1202_v12, %s1415_s7 }
  0x6c   : > { %543 = vrot.lane.b32.xlu1 %v1203_v13, %s1415_s7 }
  0x6f   : > { %445 = vrot.lane.b32.xlu0 %v1186_v16, %s1415_s7 }
  0x70   : > { %447 = vrot.lane.b32.xlu1 %v1187_v17, %s1415_s7 }
  0x73   : > { %554 = vrot.lane.b32.xlu0 %v1204_v20, %s1416_s24 }
  0x74   : > { %556 = vrot.lane.b32.xlu1 %v1205_v21, %s1416_s24  ;;  %v1385_v21 = vld [vmem:[%s1794_s1 + $0x110] sm:$0xff]  }
  0x77   : > { %458 = vrot.lane.b32.xlu0 %v1188_v25, %s1416_s24 }
  0x78   : > { %460 = vrot.lane.b32.xlu1 %v1189_v26, %s1416_s24 }
  0x7b   : > { %567 = vrot.lane.b32.xlu0 %v1206_v30, %s1417_s6 }
  0x7c   : > { %569 = vrot.lane.b32.xlu1 %v1207_v31, %s1417_s6 }
  0x7f   : > { %471 = vrot.lane.b32.xlu0 %v1190_v33, %s1417_s6 }
  0x80   : > { %473 = vrot.lane.b32.xlu1 %v1191_v34, %s1417_s6 }
  0x83   : > { %585 = vrot.lane.b32.xlu0 %v1210_v35, %s1411_s17 }
  0x84   : > { %587 = vrot.lane.b32.xlu1 %v1211_v36, %s1411_s17 }
  0x85   : > { %v298_v39 = vpop.permute.xlu0 %297 }
  0x86   : > { %v195_v40 = vpop.permute.xlu1 %194  ;;  %303 = vst.msk [vmem:[#allocation2 + $0x8] sm:$0xff] %vm200_vm1, %v298_v39 }
  0x87   : > { %201 = vst.msk [vmem:[#allocation2] sm:$0xff] %vm200_vm1, %v195_v40  ;;  %598 = vrot.lane.b32.xlu0 %v1212_v37, %s1412_s18 }
  0x88   : > { %600 = vrot.lane.b32.xlu1 %v1213_v38, %s1412_s18 }
  0x89   : > { %v300_v43 = vpop.permute.xlu0 %299 }
  0x8a   : > { %v197_v44 = vpop.permute.xlu1 %196  ;;  %304 = vst.msk [vmem:[#allocation2 + $0x30] sm:$0xff] %vm200_vm1, %v300_v43 }
  0x8b   : > { %202 = vst.msk [vmem:[#allocation2 + $0x28] sm:$0xff] %vm200_vm1, %v197_v44  ;;  %611 = vrot.lane.b32.xlu0 %v1214_v41, %s1413_s19 }
  0x8c   : > { %613 = vrot.lane.b32.xlu1 %v1215_v42, %s1413_s19 }
  0x8d   : > { %v311_v45 = vpop.permute.xlu0 %310 }
  0x8e   : > { %v313_v46 = vpop.permute.xlu1 %312  ;;  %316 = vst.msk [vmem:[#allocation2 + $0x8] sm:$0xff] %vm214_vm2, %v311_v45 }
  0x8f   : > { %317 = vst.msk [vmem:[#allocation2 + $0x30] sm:$0xff] %vm214_vm2, %v313_v46 }
  0x91   : > { %v209_v47 = vpop.permute.xlu0 %208 }
  0x92   : > { %v211_v48 = vpop.permute.xlu1 %210  ;;  %215 = vst.msk [vmem:[#allocation2] sm:$0xff] %vm214_vm2, %v209_v47 }
  0x93   : > { %216 = vst.msk [vmem:[#allocation2 + $0x28] sm:$0xff] %vm214_vm2, %v211_v48 }
  0x95   : > { %v324_v49 = vpop.permute.xlu0 %323 }
  0x96   : > { %v326_v50 = vpop.permute.xlu1 %325  ;;  %329 = vst.msk [vmem:[#allocation2 + $0x8] sm:$0xff] %vm228_vm3, %v324_v49 }
  0x97   : > { %330 = vst.msk [vmem:[#allocation2 + $0x30] sm:$0xff] %vm228_vm3, %v326_v50 }
  0x99   : > { %v223_v51 = vpop.permute.xlu0 %222 }
  0x9a   : > { %v225_v52 = vpop.permute.xlu1 %224  ;;  %229 = vst.msk [vmem:[#allocation2] sm:$0xff] %vm228_vm3, %v223_v51 }
  0x9b   : > { %230 = vst.msk [vmem:[#allocation2 + $0x28] sm:$0xff] %vm228_vm3, %v225_v52 }
  0x9d   : > { %v337_v53 = vpop.permute.xlu0 %336 }
  0x9e   : > { %v339_v54 = vpop.permute.xlu1 %338  ;;  %342 = vst.msk [vmem:[#allocation2 + $0x8] sm:$0xff] %vm242_vm4, %v337_v53 }
  0x9f   : > { %343 = vst.msk [vmem:[#allocation2 + $0x30] sm:$0xff] %vm242_vm4, %v339_v54 }
  0xa1   : > { %v237_v55 = vpop.permute.xlu0 %236 }
  0xa2   : > { %v239_v56 = vpop.permute.xlu1 %238  ;;  %243 = vst.msk [vmem:[#allocation2] sm:$0xff] %vm242_vm4, %v237_v55 }
  0xa3   : > { %244 = vst.msk [vmem:[#allocation2 + $0x28] sm:$0xff] %vm242_vm4, %v239_v56 }
  0xa5   : > { %v350_v57 = vpop.permute.xlu0 %349 }
  0xa6   : > { %v352_v58 = vpop.permute.xlu1 %351  ;;  %355 = vst.msk [vmem:[#allocation2 + $0x8] sm:$0xff] %vm256_vm5, %v350_v57 }
  0xa7   : > { %356 = vst.msk [vmem:[#allocation2 + $0x30] sm:$0xff] %vm256_vm5, %v352_v58 }
  0xa9   : > { %v251_v59 = vpop.permute.xlu0 %250 }
  0xaa   : > { %v253_v60 = vpop.permute.xlu1 %252  ;;  %257 = vst.msk [vmem:[#allocation2] sm:$0xff] %vm256_vm5, %v251_v59 }
  0xab   : > { %258 = vst.msk [vmem:[#allocation2 + $0x28] sm:$0xff] %vm256_vm5, %v253_v60 }
  0xad   : > { %v363_v61 = vpop.permute.xlu0 %362 }
  0xae   : > { %v365_v62 = vpop.permute.xlu1 %364  ;;  %368 = vst.msk [vmem:[#allocation2 + $0x8] sm:$0xff] %vm270_vm6, %v363_v61 }
  0xaf   : > { %369 = vst.msk [vmem:[#allocation2 + $0x30] sm:$0xff] %vm270_vm6, %v365_v62 }
  0xb1   : > { %v265_v63 = vpop.permute.xlu0 %264 }
  0xb2   : > { %v267_v0 = vpop.permute.xlu1 %266  ;;  %271 = vst.msk [vmem:[#allocation2] sm:$0xff] %vm270_vm6, %v265_v63 }
  0xb3   : > { %272 = vst.msk [vmem:[#allocation2 + $0x28] sm:$0xff] %vm270_vm6, %v267_v0 }
  0xb5   : > { %v376_v1 = vpop.permute.xlu0 %375 }
  0xb6   : > { %v378_v2 = vpop.permute.xlu1 %377  ;;  %381 = vst.msk [vmem:[#allocation2 + $0x8] sm:$0xff] %vm284_vm7, %v376_v1 }
  0xb7   : > { %382 = vst.msk [vmem:[#allocation2 + $0x30] sm:$0xff] %vm284_vm7, %v378_v2 }
  0xb9   : > { %v279_v3 = vpop.permute.xlu0 %278 }
  0xba   : > { %v281_v4 = vpop.permute.xlu1 %280  ;;  %285 = vst.msk [vmem:[#allocation2] sm:$0xff] %vm284_vm7, %v279_v3 }
  0xbb   : > { %286 = vst.msk [vmem:[#allocation2 + $0x28] sm:$0xff] %vm284_vm7, %v281_v4 }
  0xbd   : > { %v490_v5 = vpop.permute.xlu0 %489  ;;  %v620_v7 = vld [vmem:[#allocation2 + $0x8] sm:$0xff] }
  0xbe   : > { %v492_v6 = vpop.permute.xlu1 %491  ;;  %v625_v8 = vld [vmem:[#allocation2 + $0x30] sm:$0xff]  ;;  %495 = vst.msk [vmem:[#allocation2 + $0x18] sm:$0xff] %vm200_vm1, %v490_v5 }
  0xbf   : > { %496 = vst.msk [vmem:[#allocation2 + $0x40] sm:$0xff] %vm200_vm1, %v492_v6  ;;  %v630_v9 = vpack.c.bf16 %v625_v8, %v620_v7 }
  0xc1   : > { %958 = vmatprep.mubr.bf16.mxu0 %v630_v9  ;;  %v394_v10 = vpop.permute.xlu0 %393  ;;  %v619_v12 = vld [vmem:[#allocation2] sm:$0xff] }
  0xc2   : > { %v396_v11 = vpop.permute.xlu1 %395  ;;  %v624_v13 = vld [vmem:[#allocation2 + $0x28] sm:$0xff]  ;;  %399 = vst.msk [vmem:[#allocation2 + $0x10] sm:$0xff] %vm200_vm1, %v394_v10 }
  0xc3   : > { %400 = vst.msk [vmem:[#allocation2 + $0x38] sm:$0xff] %vm200_vm1, %v396_v11  ;;  %v629_v15 = vpack.c.bf16 %v624_v13, %v619_v12 }
  0xc5   : > { %959 = vmatmul.mubr.bf16.vlgmr.msra.gmra.mrb[0].mxu0 %v629_v15  ;;  %v503_v16 = vpop.permute.xlu0 %502 }
  0xc6   : > { %v505_v17 = vpop.permute.xlu1 %504  ;;  %1306 = vmatpush3.bf16.msra.mxu0 %v1383_v14  ;;  %1313 = vmatprep.mubr.msk.bf16.mxu0 %vm1419_vm8, %v1418_v32  ;;  %508 = vst.msk [vmem:[#allocation2 + $0x18] sm:$0xff] %vm214_vm2, %v503_v16 }
  0xc7   : > { %509 = vst.msk [vmem:[#allocation2 + $0x40] sm:$0xff] %vm214_vm2, %v505_v17  ;;  %1307 = vmatprep.subr.bf16.mxu0 %v1418_v32 }
  0xc9   : > { %v407_v19 = vpop.permute.xlu0 %406 }
  0xca   : > { %v409_v20 = vpop.permute.xlu1 %408  ;;  %1308 = vmatpush3.bf16.msra.mxu0 %v1384_v18  ;;  %412 = vst.msk [vmem:[#allocation2 + $0x10] sm:$0xff] %vm214_vm2, %v407_v19 }
  0xcb   : > { %413 = vst.msk [vmem:[#allocation2 + $0x38] sm:$0xff] %vm214_vm2, %v409_v20  ;;  %1309 = vmatprep.subr.bf16.mxu0 %v1418_v32 }
  0xcd   : > { %v516_v22 = vpop.permute.xlu0 %515 }
  0xce   : > { %v518_v23 = vpop.permute.xlu1 %517  ;;  %1310 = vmatpush3.bf16.msra.mxu0 %v1385_v21  ;;  %521 = vst.msk [vmem:[#allocation2 + $0x18] sm:$0xff] %vm228_vm3, %v516_v22 }
  0xcf   : > { %522 = vst.msk [vmem:[#allocation2 + $0x40] sm:$0xff] %vm228_vm3, %v518_v23  ;;  %1311 = vmatprep.subr.bf16.mxu0 %v1418_v32 }
  0xd1   : > { %v420_v25 = vpop.permute.xlu0 %419 }
  0xd2   : > { %v422_v26 = vpop.permute.xlu1 %421  ;;  %1312 = vmatpush3.bf16.msra.mxu0 %v1386_v24  ;;  %425 = vst.msk [vmem:[#allocation2 + $0x10] sm:$0xff] %vm228_vm3, %v420_v25 }
  0xd3   : > { %426 = vst.msk [vmem:[#allocation2 + $0x38] sm:$0xff] %vm228_vm3, %v422_v26 }
  0xd5   : > { %v529_v27 = vpop.permute.xlu0 %528 }
  0xd6   : > { %v531_v28 = vpop.permute.xlu1 %530  ;;  %534 = vst.msk [vmem:[#allocation2 + $0x18] sm:$0xff] %vm242_vm4, %v529_v27 }
  0xd7   : > { %535 = vst.msk [vmem:[#allocation2 + $0x40] sm:$0xff] %vm242_vm4, %v531_v28 }
  0xd9   : > { %v433_v29 = vpop.permute.xlu0 %432 }
  0xda   : > { %v435_v30 = vpop.permute.xlu1 %434  ;;  %438 = vst.msk [vmem:[#allocation2 + $0x10] sm:$0xff] %vm242_vm4, %v433_v29 }
  0xdb   : > { %439 = vst.msk [vmem:[#allocation2 + $0x38] sm:$0xff] %vm242_vm4, %v435_v30 }
  0xdd   : > { %v542_v31 = vpop.permute.xlu0 %541 }
  0xde   : > { %v544_v32 = vpop.permute.xlu1 %543  ;;  %547 = vst.msk [vmem:[#allocation2 + $0x18] sm:$0xff] %vm256_vm5, %v542_v31 }
  0xdf   : > { %548 = vst.msk [vmem:[#allocation2 + $0x40] sm:$0xff] %vm256_vm5, %v544_v32 }
  0xe1   : > { %v446_v33 = vpop.permute.xlu0 %445 }
  0xe2   : > { %v448_v34 = vpop.permute.xlu1 %447  ;;  %451 = vst.msk [vmem:[#allocation2 + $0x10] sm:$0xff] %vm256_vm5, %v446_v33 }
  0xe3   : > { %452 = vst.msk [vmem:[#allocation2 + $0x38] sm:$0xff] %vm256_vm5, %v448_v34 }
  0xe5   : > { %v555_v35 = vpop.permute.xlu0 %554 }
  0xe6   : > { %v557_v36 = vpop.permute.xlu1 %556  ;;  %560 = vst.msk [vmem:[#allocation2 + $0x18] sm:$0xff] %vm270_vm6, %v555_v35 }
  0xe7   : > { %561 = vst.msk [vmem:[#allocation2 + $0x40] sm:$0xff] %vm270_vm6, %v557_v36 }
  0xe9   : > { %v459_v37 = vpop.permute.xlu0 %458 }
  0xea   : > { %v461_v38 = vpop.permute.xlu1 %460  ;;  %464 = vst.msk [vmem:[#allocation2 + $0x10] sm:$0xff] %vm270_vm6, %v459_v37 }
  0xeb   : > { %465 = vst.msk [vmem:[#allocation2 + $0x38] sm:$0xff] %vm270_vm6, %v461_v38 }
  0xed   : > { %v568_v39 = vpop.permute.xlu0 %567 }
  0xee   : > { %v570_v40 = vpop.permute.xlu1 %569  ;;  %573 = vst.msk [vmem:[#allocation2 + $0x18] sm:$0xff] %vm284_vm7, %v568_v39 }
  0xef   : > { %574 = vst.msk [vmem:[#allocation2 + $0x40] sm:$0xff] %vm284_vm7, %v570_v40 }
  0xf1   : > { %v472_v41 = vpop.permute.xlu0 %471 }
  0xf2   : > { %v474_v42 = vpop.permute.xlu1 %473  ;;  %477 = vst.msk [vmem:[#allocation2 + $0x10] sm:$0xff] %vm284_vm7, %v472_v41 }
  0xf3   : > { %478 = vst.msk [vmem:[#allocation2 + $0x38] sm:$0xff] %vm284_vm7, %v474_v42 }
  0xf5   : > { %v586_v43 = vpop.permute.xlu0 %585  ;;  %v622_v45 = vld [vmem:[#allocation2 + $0x18] sm:$0xff] }
  0xf6   : > { %v588_v44 = vpop.permute.xlu1 %587  ;;  %v627_v46 = vld [vmem:[#allocation2 + $0x40] sm:$0xff]  ;;  %591 = vst.msk [vmem:[#allocation2 + $0x20] sm:$0xff] %vm200_vm1, %v586_v43 }
  0xf7   : > { %592 = vst.msk [vmem:[#allocation2 + $0x48] sm:$0xff] %vm200_vm1, %v588_v44  ;;  %v632_v47 = vpack.c.bf16 %v627_v46, %v622_v45 }
  0xf9   : > { %999 = vmatprep.mubr.bf16.mxu1 %v632_v47  ;;  %v599_v48 = vpop.permute.xlu0 %598  ;;  %v621_v50 = vld [vmem:[#allocation2 + $0x10] sm:$0xff] }
  0xfa   : > { %v601_v49 = vpop.permute.xlu1 %600  ;;  %v626_v51 = vld [vmem:[#allocation2 + $0x38] sm:$0xff]  ;;  %604 = vst.msk [vmem:[#allocation2 + $0x20] sm:$0xff] %vm214_vm2, %v599_v48 }
  0xfb   : > { %605 = vst.msk [vmem:[#allocation2 + $0x48] sm:$0xff] %vm214_vm2, %v601_v49  ;;  %v631_v52 = vpack.c.bf16 %v626_v51, %v621_v50 }
  0xfd   : > { %1000 = vmatmul.mubr.bf16.vlgmr.msra.gmra.mrb[0].mxu1 %v631_v52  ;;  %v612_v53 = vpop.permute.xlu0 %611 }
  0xfe   : > { %v614_v54 = vpop.permute.xlu1 %613  ;;  %617 = vst.msk [vmem:[#allocation2 + $0x20] sm:$0xff] %vm228_vm3, %v612_v53 }
  0xff   : > { %618 = vst.msk [vmem:[#allocation2 + $0x48] sm:$0xff] %vm228_vm3, %v614_v54 }
 0x105   : > { %v623_v55 = vld [vmem:[#allocation2 + $0x20] sm:$0xff] }
 0x106   : > { %v628_v56 = vld [vmem:[#allocation2 + $0x48] sm:$0xff] }
 0x107   : > { %v633_v57 = vpack.c.bf16 %v628_v56, %v623_v55 }
 0x109   : > { %1314 = vmatmul.mubr.msk.bf16.vlgmr.msra.gmra.mrb[4].mxu0 %vm922_vm9, %v633_v57 }
 0x198   : > { %v1272_v58 = vpop.f32.mrb[0].mxu0 }
 0x199   : > { %v1273_v59 = vpop.f32.mrb[1].mxu0 }
 0x19a   : > { %v1274_v60 = vadd.f32 %v1273_v59, %v1272_v58  ;;  %v1275_v61 = vpop.f32.mrb[2].mxu0 }
 0x19b   : > { %v1276_v62 = vpop.f32.mrb[3].mxu0 }
 0x19c   : > { %v1277_v63 = vadd.f32 %v1276_v62, %v1275_v61 }
 0x1d0   : > { %v1294_v0 = vpop.f32.mrb[0].mxu1 }
 0x1d1   : > { %v1295_v1 = vpop.f32.mrb[1].mxu1 }
 0x1d2   : > { %v1296_v2 = vadd.f32 %v1295_v1, %v1294_v0  ;;  %v1297_v3 = vpop.f32.mrb[2].mxu1 }
 0x1d3   : > { %v1298_v4 = vpop.f32.mrb[3].mxu1 }
 0x1d4   : > { %v1299_v5 = vadd.f32 %v1298_v4, %v1297_v3  ;;  %v1002_v6 = vadd.f32 %v1296_v2, %v1274_v60 }
 0x1d6   : > { %v1005_v7 = vadd.f32 %v1299_v5, %v1277_v63 }
 0x1dc   : > { %v1042_v8 = vpop.f32.mrb[4].mxu0 }
 0x1dd   : > { %v1043_v9 = vadd.f32 %v1042_v8, %v1002_v6  ;;  %v1315_v10 = vpop.f32.mrb[5].mxu0 }
 0x1de   : > { %v1045_v11 = vpop.f32.mrb[6].mxu0 }
 0x1df   : > { %1049 = vst [vmem:[%s181_s21] sm:$0xff] %v1043_v9  ;;  %v1046_v12 = vadd.f32 %v1045_v11, %v1005_v7  ;;  %v1316_v13 = vpop.f32.mrb[7].mxu0 }
 0x1e1   : > { %1050 = vst [vmem:[%s181_s21 + $0x8] sm:$0xff] %v1046_v12 }
 0x1e2 PF: > { %s12_s11 = sadd.s32 1, %s1409_s11   ;;  %s1796_s9 = smov %s1405_s10 }
 0x1e3   : > { %p9_p5 = scmp.ge.s32.totalorder %s12_s11, 4   ;;  %s1797_s10 = smov %s1799_s12 }
 0x1e5   :  { %11 = sbr.rel (!%p9_p5) target bundleno = 2 (0x2), region = 93 }

</bundles_post_ra>
